<compile_context>
chip_gen: v5e
topology: v5e:2x2
jax: 0.10.0
libtpu: 0.0.40
codegen_flags: <defaults>
</compile_context>

<pallas_src>
import jax
import jax.numpy as jnp
from jax import lax
from jax.experimental import pallas as pl
from jax.experimental.pallas import tpu as pltpu


# -------------------- Pallas kernel --------------------
def lstm_recurrence_kernel(x_ref, wx_ref, wh_ref, b_ref, out_ref,
                           h_sc, max_sc, gx_sc):
    """One grid step = one chunk of timesteps.

    x_ref  : (chunk*Bp, E)  bf16  time-major activations, rows grouped by timestep
    wx_ref : (E, 4H)        bf16  fused gates, layout [f, o, i, c]
    wh_ref : (4H, 4H)       bf16  rows [3H:4H] hold Wh (same layout), other rows zero
    b_ref  : (1, 4H)        f32   fused bias, layout [f, o, i, c]
    out_ref: (Bp, 4H)       f32   lane-group 3 ([3H:4H]) holds max_t h_t (pre-tanh)
    """
    c = pl.program_id(0)

    @pl.when(c == 0)
    def _():
        h_sc[...] = jnp.zeros_like(h_sc)
        max_sc[...] = jnp.full_like(max_sc, -jnp.inf)

    chunk, bp, g4 = gx_sc.shape
    h_dim = g4 // 4

    # Hoisted input projection for the whole chunk: one bf16 MXU matmul with a full
    # 128-lane (4H) output, f32 accumulation, bias folded in.
    gx = jnp.dot(x_ref[...], wx_ref[...],
                 preferred_element_type=jnp.float32) + b_ref[...]
    gx_sc[...] = gx.reshape(chunk, bp, g4)

    wh = wh_ref[...]                       # hoist the weight load out of the loop

    def step(t, carry):
        h_prev, m_prev = carry             # (Bp, 4H) f32, valid data in lane-group 3
        # Fused pre-activation: Gx[t] + h @ Wh.  h_prev's garbage lane-groups hit the
        # zero rows of wh_pad, so the carry never needs slicing on the critical path.
        z = gx_sc[t] + jnp.dot(h_prev.astype(wh.dtype), wh,
                               preferred_element_type=jnp.float32)
        # z lane-groups: [zf, zo, zi, zc]
        s = jax.nn.sigmoid(z)                            # full-width EUP: [ft, ot, it, *]
        tz = jnp.tanh(z)                                 # full-width EUP: [*, *, *, c~]
        r2 = pltpu.roll(s, shift=2 * h_dim, axis=1)      # [it, *, ft, ot] (2H: dir-free)
        a = pltpu.roll(s + r2, shift=h_dim, axis=1)      # (ft+it) in groups 1 and 3
        ct = a * tz                                      # group 3: (ft + it) * c~
        ht = r2 * jnp.tanh(ct)                           # group 3: ot * tanh(ct) == h_t
        return ht, jnp.maximum(m_prev, ht)

    h, m = lax.fori_loop(0, chunk, step, (h_sc[...], max_sc[...]),
                         unroll=min(chunk, 8))           # bounded unroll (vreg pressure)
    h_sc[...] = h
    max_sc[...] = m

    @pl.when(c == pl.num_programs(0) - 1)
    def _():
        out_ref[...] = m


# -------------------- wrapper --------------------
_KORDER = (0, 3, 1, 2)   # reference gate order is [f, i, c, o]; kernel layout is [f, o, i, c]


def _pick_chunk(seq_len, bp, target_rows=512):
    """Largest divisor of seq_len with chunk*bp <= ~target_rows (amortize grid overhead)."""
    limit = max(1, target_rows // bp)
    best = 1
    for cand in range(1, seq_len + 1):
        if seq_len % cand == 0 and cand <= limit:
            best = cand
    return best


def mylstm_forward(x_ids, params, chunk=None):
    """x_ids: (batch, seq) int32 token ids."""
    embed_w = params["embed"]                     # (V, E)
    w_gates = params["w_gates"]                   # (4, E+H, H), torch gate order [f, i, c, o]
    b_gates = params["b_gates"]                   # (4, H)
    wout, bout = params["wout"], params["bout"]

    B, S = x_ids.shape
    E = embed_w.shape[1]
    H = w_gates.shape[2]
    G4 = 4 * H
    Bp = ((B + 7) // 8) * 8                       # pad batch (sublane dim) to multiple of 8
    # For real workloads, pad/block the batch toward the MXU row count (128 on v5e,
    # 256 on v6e/v7x) and on v7x add a leading "parallel" batch-tile grid axis so the
    # two TensorCores each run half of the serial recurrence.

    if chunk is None:
        chunk = _pick_chunk(S, Bp)
    assert S % chunk == 0
    n_chunks = S // chunk

    # Fuse weights into kernel gate layout [f, o, i, c]; zero-pad Wh to (4H,4H) with the
    # real rows in [3H:4H] so the full-width h carry needs no slicing inside the kernel.
    wx = jnp.concatenate([w_gates[g, :E, :] for g in _KORDER], axis=1)        # (E, 4H)
    wh = jnp.concatenate([w_gates[g, E:, :] for g in _KORDER], axis=1)        # (H, 4H)
    wh_pad = jnp.concatenate([jnp.zeros((3 * H, G4), wh.dtype), wh], axis=0)  # (4H, 4H)
    b = jnp.concatenate([b_gates[g] for g in _KORDER], axis=0).reshape(1, G4)

    # bf16 weights / activations for the MXU; state & accumulation stay f32.
    wx = wx.astype(jnp.bfloat16)
    wh_pad = wh_pad.astype(jnp.bfloat16)

    # Glue: gather embeddings directly in time-major order (no extra transpose pass),
    # pad the batch, flatten rows grouped by timestep.  Dropout == identity (eval).
    x_tm = embed_w[x_ids.T]                                    # (S, B, E)
    x_tm = jnp.pad(x_tm, ((0, 0), (0, Bp - B), (0, 0)))        # (S, Bp, E)
    x_flat = x_tm.reshape(S * Bp, E).astype(jnp.bfloat16)      # (S*Bp, E)

    # Explicit VMEM budget (v7x: 64 MiB physical, 32 MiB scoped default).
    weight_bytes = (E * G4 + G4 * G4) * 2 + G4 * 4             # bf16 weights + f32 bias
    x_blk_bytes = chunk * Bp * E * 2                           # bf16, double-buffered
    gx_bytes = chunk * Bp * G4 * 4
    state_bytes = 2 * Bp * G4 * 4
    out_bytes = Bp * G4 * 4
    need = weight_bytes + 2 * x_blk_bytes + gx_bytes + state_bytes + 2 * out_bytes
    vmem_limit = int(min(64 * 2 ** 20, max(4 * 2 ** 20, 2 * need)))

    const2 = lambda c: (0, 0)
    grid_spec = pltpu.PrefetchScalarGridSpec(
        num_scalar_prefetch=0,
        grid=(n_chunks,),
        in_specs=[
            pl.BlockSpec((chunk * Bp, E), lambda c: (c, 0)),               # x chunk (streamed)
            pl.BlockSpec((E, G4), const2, pipeline_mode=pl.Buffered(1)),   # Wx (constant)
            pl.BlockSpec((G4, G4), const2, pipeline_mode=pl.Buffered(1)),  # Wh padded (constant)
            pl.BlockSpec((1, G4), const2, pipeline_mode=pl.Buffered(1)),   # bias (constant)
        ],
        out_specs=pl.BlockSpec((Bp, G4), const2),
        scratch_shapes=[
            pltpu.VMEM((Bp, G4), jnp.float32),          # h carry across chunks
            pltpu.VMEM((Bp, G4), jnp.float32),          # running max of h_t
            pltpu.VMEM((chunk, Bp, G4), jnp.float32),   # hoisted Gx = x@Wx + b
        ],
    )

    pooled = pl.pallas_call(
        lstm_recurrence_kernel,
        out_shape=jax.ShapeDtypeStruct((Bp, G4), jnp.float32),
        grid_spec=grid_spec,
        compiler_params=pltpu.CompilerParams(
            dimension_semantics=("arbitrary",),         # serial recurrence over chunks
            vmem_limit_bytes=vmem_limit,
        ),
    )(x_flat, wx, wh_pad, b)

    # Valid pooled max lives in lane-group 3; tanh is monotone so it commutes with max.
    pooled = pooled[:B, 3 * H:4 * H]
    return jnp.tanh(pooled) @ wout + bout


# -------------------- pure-JAX reference (torch semantics, f32) --------------------
def mylstm_ref(x_ids, params):
    embed_w = params["embed"]
    w, bg = params["w_gates"], params["b_gates"]
    x = embed_w[x_ids]                              # (B, S, E)
    x = jnp.transpose(x, (1, 0, 2))                 # (S, B, E)
    S, B, _ = x.shape
    H = w.shape[2]
    h = jnp.zeros((B, H), jnp.float32)
    hs = []
    for t in range(S):
        xh = jnp.concatenate([x[t], h], axis=1)     # cat([xt, h_prev], 1)
        ft = jax.nn.sigmoid(xh @ w[0] + bg[0])
        it = jax.nn.sigmoid(xh @ w[1] + bg[1])
        ctil = jnp.tanh(xh @ w[2] + bg[2])
        ot = jax.nn.sigmoid(xh @ w[3] + bg[3])
        ct = ft * ctil + it * ctil
        h = ot * jnp.tanh(ct)
        hs.append(h)
    out = jnp.stack(hs, 0)                          # (S, B, H)
    out = jnp.transpose(out, (1, 0, 2))             # (B, S, H)
    out = jnp.tanh(jnp.transpose(out, (0, 2, 1)))   # (B, H, S)
    out = jnp.max(out, axis=2)                      # max_pool1d over S
    return out @ params["wout"] + params["bout"]


# -------------------- setup & run --------------------
def make_params(key, vocab, embed_dim, hidden, class_num):
    ks = jax.random.split(key, 5)
    in_dim = embed_dim + hidden
    sg = 1.0 / jnp.sqrt(jnp.float32(in_dim))
    so = 1.0 / jnp.sqrt(jnp.float32(hidden))
    return {
        "embed": jax.random.normal(ks[2], (vocab, embed_dim), jnp.float32) * 0.1,
        # Per-gate Linear(E+H, H) weights (transposed to (in, out)) and biases,
        # torch gate order [f, i, c, o].
        "w_gates": jax.random.uniform(ks[0], (4, in_dim, hidden), jnp.float32, -sg, sg),
        "b_gates": jax.random.uniform(ks[1], (4, hidden), jnp.float32, -sg, sg),
        "wout": jax.random.uniform(ks[3], (hidden, class_num), jnp.float32, -so, so),
        "bout": jax.random.uniform(ks[4], (1, class_num), jnp.float32, -so, so),
    }


if __name__ == "__main__":
    key = jax.random.PRNGKey(0)
    batch, seq = 2, 8
    vocab, embed_dim = 50, 32        # args.embed_num, args.embed_dim (== args.input_size)
    hidden, class_num = 32, 4        # args.hidden_size, args.class_num

    k_ids, k_params = jax.random.split(key)
    x_ids = jax.random.randint(k_ids, (batch, seq), 0, vocab, dtype=jnp.int32)
    params = make_params(k_params, vocab, embed_dim, hidden, class_num)

    out = jax.block_until_ready(mylstm_forward(x_ids, params))
    ref = mylstm_ref(x_ids, params)
    assert out.shape == (batch, class_num)
    # bf16 weights/activations through the recurrence vs f32 reference -> looser tolerance.
    err = float(jnp.max(jnp.abs(out - ref)))
    assert jnp.allclose(out, ref, atol=2e-2, rtol=2e-2), err
    print("KERNEL_OK")
</pallas_src>

<mosaic_0001>
module attributes {stable_mosaic.version = 11 : i64} {
  func.func @lstm_recurrence_kernel(%arg0: i32, %arg1: memref<64x32xbf16, #tpu.memory_space<vmem>>, %arg2: memref<32x128xbf16, #tpu.memory_space<vmem>>, %arg3: memref<128x128xbf16, #tpu.memory_space<vmem>>, %arg4: memref<1x128xf32, #tpu.memory_space<vmem>>, %arg5: memref<8x128xf32, #tpu.memory_space<vmem>>, %arg6: memref<8x128xf32, #tpu.memory_space<vmem>>, %arg7: memref<8x128xf32, #tpu.memory_space<vmem>>, %arg8: memref<8x8x128xf32, #tpu.memory_space<vmem>>) attributes {dimension_semantics = [#tpu.dimension_semantics<arbitrary>], iteration_bounds = array<i64: 1>, scalar_prefetch = 0 : i64, scratch_operands = 3 : i64, tpu.core_type = #tpu.core_type<tc>, window_params = [{transform_indices = @transform_0, window_bounds = array<i64: 64, 32>}, {pipeline_mode = #tpu.pipeline_mode<synchronous>, transform_indices = @transform_1, window_bounds = array<i64: 32, 128>}, {pipeline_mode = #tpu.pipeline_mode<synchronous>, transform_indices = @transform_2, window_bounds = array<i64: 128, 128>}, {pipeline_mode = #tpu.pipeline_mode<synchronous>, transform_indices = @transform_3, window_bounds = array<i64: 1, 128>}, {pipeline_mode = #tpu.pipeline_mode<synchronous>, transform_indices = @transform_4, window_bounds = array<i64: 8, 128>}]} {
    %c0_i32 = arith.constant 0 : i32
    %0 = arith.cmpi eq, %arg0, %c0_i32 : i32
    %1 = arith.extui %0 : i1 to i32
    %c0_i32_0 = arith.constant 0 : i32
    %2 = arith.cmpi ne, %1, %c0_i32_0 : i32
    scf.if %2 {
      %cst_68 = arith.constant 0.000000e+00 : f32
      %171 = vector.broadcast %cst_68 : f32 to vector<8x128xf32>
      %c0_69 = arith.constant 0 : index
      %c0_70 = arith.constant 0 : index
      %172 = vector.load %arg6[%c0_69, %c0_70] : memref<8x128xf32, #tpu.memory_space<vmem>>, vector<8x128xf32>
      tpu.vector_store %arg6[%c0_69, %c0_70], %171 {strides = array<i32>} : memref<8x128xf32, #tpu.memory_space<vmem>>, vector<8x128xf32>,
      %cst_71 = arith.constant 0xFF800000 : f32
      %173 = vector.broadcast %cst_71 : f32 to vector<8x128xf32>
      %c0_72 = arith.constant 0 : index
      %c0_73 = arith.constant 0 : index
      %174 = vector.load %arg7[%c0_72, %c0_73] : memref<8x128xf32, #tpu.memory_space<vmem>>, vector<8x128xf32>
      tpu.vector_store %arg7[%c0_72, %c0_73], %173 {strides = array<i32>} : memref<8x128xf32, #tpu.memory_space<vmem>>, vector<8x128xf32>,
    } else {
    }
    %c0 = arith.constant 0 : index
    %c0_1 = arith.constant 0 : index
    %3 = vector.load %arg1[%c0, %c0_1] : memref<64x32xbf16, #tpu.memory_space<vmem>>, vector<64x32xbf16>
    %c0_2 = arith.constant 0 : index
    %c0_3 = arith.constant 0 : index
    %4 = vector.load %arg2[%c0_2, %c0_3] : memref<32x128xbf16, #tpu.memory_space<vmem>>, vector<32x128xbf16>
    %cst = arith.constant dense<0.000000e+00> : vector<64x128xf32>
    %5 = tpu.matmul %3, %4, %cst {dimension_numbers = #tpu.dot_dimension_numbers<[1], [0], [0], [1], [0, 0, 1, 1], [], []>} : vector<64x32xbf16>, vector<32x128xbf16>, vector<64x128xf32> -> vector<64x128xf32>
    %c0_4 = arith.constant 0 : index
    %c0_5 = arith.constant 0 : index
    %6 = vector.load %arg4[%c0_4, %c0_5] : memref<1x128xf32, #tpu.memory_space<vmem>>, vector<1x128xf32>
    %7 = vector.broadcast %6 : vector<1x128xf32> to vector<64x128xf32>
    %8 = arith.addf %5, %7 : vector<64x128xf32>
    %9 = vector.shape_cast %8 : vector<64x128xf32> to vector<8x8x128xf32>
    %c0_6 = arith.constant 0 : index
    %c0_7 = arith.constant 0 : index
    %c0_8 = arith.constant 0 : index
    %10 = vector.load %arg8[%c0_6, %c0_7, %c0_8] : memref<8x8x128xf32, #tpu.memory_space<vmem>>, vector<8x8x128xf32>
    tpu.vector_store %arg8[%c0_6, %c0_7, %c0_8], %9 {strides = array<i32>} : memref<8x8x128xf32, #tpu.memory_space<vmem>>, vector<8x8x128xf32>,
    %c0_9 = arith.constant 0 : index
    %c0_10 = arith.constant 0 : index
    %11 = vector.load %arg3[%c0_9, %c0_10] : memref<128x128xbf16, #tpu.memory_space<vmem>>, vector<128x128xbf16>
    %c0_11 = arith.constant 0 : index
    %c0_12 = arith.constant 0 : index
    %12 = vector.load %arg6[%c0_11, %c0_12] : memref<8x128xf32, #tpu.memory_space<vmem>>, vector<8x128xf32>
    %c0_13 = arith.constant 0 : index
    %c0_14 = arith.constant 0 : index
    %13 = vector.load %arg7[%c0_13, %c0_14] : memref<8x128xf32, #tpu.memory_space<vmem>>, vector<8x128xf32>
    %c0_i32_15 = arith.constant 0 : i32
    %14 = arith.index_cast %c0_i32_15 : i32 to index
    %c0_16 = arith.constant 0 : index
    %c0_17 = arith.constant 0 : index
    %15 = vector.load %arg8[%14, %c0_16, %c0_17] : memref<8x8x128xf32, #tpu.memory_space<vmem>>, vector<1x8x128xf32>
    %16 = vector.shape_cast %15 : vector<1x8x128xf32> to vector<8x128xf32>
    %17 = arith.truncf %12 : vector<8x128xf32> to vector<8x128xbf16>
    %cst_18 = arith.constant dense<0.000000e+00> : vector<8x128xf32>
    %18 = tpu.matmul %17, %11, %cst_18 {dimension_numbers = #tpu.dot_dimension_numbers<[1], [0], [0], [1], [0, 0, 1, 1], [], []>} : vector<8x128xbf16>, vector<128x128xbf16>, vector<8x128xf32> -> vector<8x128xf32>
    %19 = arith.addf %16, %18 : vector<8x128xf32>
    %20 = arith.negf %19 : vector<8x128xf32>
    %21 = math.exp %20 : vector<8x128xf32>
    %cst_19 = arith.constant 1.000000e+00 : f32
    %22 = vector.broadcast %cst_19 : f32 to vector<8x128xf32>
    %23 = arith.addf %22, %21 : vector<8x128xf32>
    %24 = arith.divf %22, %23 : vector<8x128xf32>
    %25 = math.tanh %19 : vector<8x128xf32>
    %c64_i32 = arith.constant 64 : i32
    %26 = tpu.dynamic_rotate %24 by %c64_i32 dim 1 : vector<8x128xf32>, i32 -> vector<8x128xf32>
    %27 = arith.addf %24, %26 : vector<8x128xf32>
    %c32_i32 = arith.constant 32 : i32
    %28 = tpu.dynamic_rotate %27 by %c32_i32 dim 1 : vector<8x128xf32>, i32 -> vector<8x128xf32>
    %29 = arith.mulf %28, %25 : vector<8x128xf32>
    %30 = math.tanh %29 : vector<8x128xf32>
    %31 = arith.mulf %26, %30 : vector<8x128xf32>
    %32 = arith.maximumf %13, %31 : vector<8x128xf32>
    %c1_i32 = arith.constant 1 : i32
    %33 = arith.index_cast %c1_i32 : i32 to index
    %c0_20 = arith.constant 0 : index
    %c0_21 = arith.constant 0 : index
    %34 = vector.load %arg8[%33, %c0_20, %c0_21] : memref<8x8x128xf32, #tpu.memory_space<vmem>>, vector<1x8x128xf32>
    %35 = vector.shape_cast %34 : vector<1x8x128xf32> to vector<8x128xf32>
    %36 = arith.truncf %31 : vector<8x128xf32> to vector<8x128xbf16>
    %cst_22 = arith.constant dense<0.000000e+00> : vector<8x128xf32>
    %37 = tpu.matmul %36, %11, %cst_22 {dimension_numbers = #tpu.dot_dimension_numbers<[1], [0], [0], [1], [0, 0, 1, 1], [], []>} : vector<8x128xbf16>, vector<128x128xbf16>, vector<8x128xf32> -> vector<8x128xf32>
    %38 = arith.addf %35, %37 : vector<8x128xf32>
    %39 = arith.negf %38 : vector<8x128xf32>
    %40 = math.exp %39 : vector<8x128xf32>
    %cst_23 = arith.constant 1.000000e+00 : f32
    %41 = vector.broadcast %cst_23 : f32 to vector<8x128xf32>
    %42 = arith.addf %41, %40 : vector<8x128xf32>
    %43 = arith.divf %41, %42 : vector<8x128xf32>
    %44 = math.tanh %38 : vector<8x128xf32>
    %c64_i32_24 = arith.constant 64 : i32
    %45 = tpu.dynamic_rotate %43 by %c64_i32_24 dim 1 : vector<8x128xf32>, i32 -> vector<8x128xf32>
    %46 = arith.addf %43, %45 : vector<8x128xf32>
    %c32_i32_25 = arith.constant 32 : i32
    %47 = tpu.dynamic_rotate %46 by %c32_i32_25 dim 1 : vector<8x128xf32>, i32 -> vector<8x128xf32>
    %48 = arith.mulf %47, %44 : vector<8x128xf32>
    %49 = math.tanh %48 : vector<8x128xf32>
    %50 = arith.mulf %45, %49 : vector<8x128xf32>
    %51 = arith.maximumf %32, %50 : vector<8x128xf32>
    %c2_i32 = arith.constant 2 : i32
    %52 = arith.index_cast %c2_i32 : i32 to index
    %c0_26 = arith.constant 0 : index
    %c0_27 = arith.constant 0 : index
    %53 = vector.load %arg8[%52, %c0_26, %c0_27] : memref<8x8x128xf32, #tpu.memory_space<vmem>>, vector<1x8x128xf32>
    %54 = vector.shape_cast %53 : vector<1x8x128xf32> to vector<8x128xf32>
    %55 = arith.truncf %50 : vector<8x128xf32> to vector<8x128xbf16>
    %cst_28 = arith.constant dense<0.000000e+00> : vector<8x128xf32>
    %56 = tpu.matmul %55, %11, %cst_28 {dimension_numbers = #tpu.dot_dimension_numbers<[1], [0], [0], [1], [0, 0, 1, 1], [], []>} : vector<8x128xbf16>, vector<128x128xbf16>, vector<8x128xf32> -> vector<8x128xf32>
    %57 = arith.addf %54, %56 : vector<8x128xf32>
    %58 = arith.negf %57 : vector<8x128xf32>
    %59 = math.exp %58 : vector<8x128xf32>
    %cst_29 = arith.constant 1.000000e+00 : f32
    %60 = vector.broadcast %cst_29 : f32 to vector<8x128xf32>
    %61 = arith.addf %60, %59 : vector<8x128xf32>
    %62 = arith.divf %60, %61 : vector<8x128xf32>
    %63 = math.tanh %57 : vector<8x128xf32>
    %c64_i32_30 = arith.constant 64 : i32
    %64 = tpu.dynamic_rotate %62 by %c64_i32_30 dim 1 : vector<8x128xf32>, i32 -> vector<8x128xf32>
    %65 = arith.addf %62, %64 : vector<8x128xf32>
    %c32_i32_31 = arith.constant 32 : i32
    %66 = tpu.dynamic_rotate %65 by %c32_i32_31 dim 1 : vector<8x128xf32>, i32 -> vector<8x128xf32>
    %67 = arith.mulf %66, %63 : vector<8x128xf32>
    %68 = math.tanh %67 : vector<8x128xf32>
    %69 = arith.mulf %64, %68 : vector<8x128xf32>
    %70 = arith.maximumf %51, %69 : vector<8x128xf32>
    %c3_i32 = arith.constant 3 : i32
    %71 = arith.index_cast %c3_i32 : i32 to index
    %c0_32 = arith.constant 0 : index
    %c0_33 = arith.constant 0 : index
    %72 = vector.load %arg8[%71, %c0_32, %c0_33] : memref<8x8x128xf32, #tpu.memory_space<vmem>>, vector<1x8x128xf32>
    %73 = vector.shape_cast %72 : vector<1x8x128xf32> to vector<8x128xf32>
    %74 = arith.truncf %69 : vector<8x128xf32> to vector<8x128xbf16>
    %cst_34 = arith.constant dense<0.000000e+00> : vector<8x128xf32>
    %75 = tpu.matmul %74, %11, %cst_34 {dimension_numbers = #tpu.dot_dimension_numbers<[1], [0], [0], [1], [0, 0, 1, 1], [], []>} : vector<8x128xbf16>, vector<128x128xbf16>, vector<8x128xf32> -> vector<8x128xf32>
    %76 = arith.addf %73, %75 : vector<8x128xf32>
    %77 = arith.negf %76 : vector<8x128xf32>
    %78 = math.exp %77 : vector<8x128xf32>
    %cst_35 = arith.constant 1.000000e+00 : f32
    %79 = vector.broadcast %cst_35 : f32 to vector<8x128xf32>
    %80 = arith.addf %79, %78 : vector<8x128xf32>
    %81 = arith.divf %79, %80 : vector<8x128xf32>
    %82 = math.tanh %76 : vector<8x128xf32>
    %c64_i32_36 = arith.constant 64 : i32
    %83 = tpu.dynamic_rotate %81 by %c64_i32_36 dim 1 : vector<8x128xf32>, i32 -> vector<8x128xf32>
    %84 = arith.addf %81, %83 : vector<8x128xf32>
    %c32_i32_37 = arith.constant 32 : i32
    %85 = tpu.dynamic_rotate %84 by %c32_i32_37 dim 1 : vector<8x128xf32>, i32 -> vector<8x128xf32>
    %86 = arith.mulf %85, %82 : vector<8x128xf32>
    %87 = math.tanh %86 : vector<8x128xf32>
    %88 = arith.mulf %83, %87 : vector<8x128xf32>
    %89 = arith.maximumf %70, %88 : vector<8x128xf32>
    %c4_i32 = arith.constant 4 : i32
    %90 = arith.index_cast %c4_i32 : i32 to index
    %c0_38 = arith.constant 0 : index
    %c0_39 = arith.constant 0 : index
    %91 = vector.load %arg8[%90, %c0_38, %c0_39] : memref<8x8x128xf32, #tpu.memory_space<vmem>>, vector<1x8x128xf32>
    %92 = vector.shape_cast %91 : vector<1x8x128xf32> to vector<8x128xf32>
    %93 = arith.truncf %88 : vector<8x128xf32> to vector<8x128xbf16>
    %cst_40 = arith.constant dense<0.000000e+00> : vector<8x128xf32>
    %94 = tpu.matmul %93, %11, %cst_40 {dimension_numbers = #tpu.dot_dimension_numbers<[1], [0], [0], [1], [0, 0, 1, 1], [], []>} : vector<8x128xbf16>, vector<128x128xbf16>, vector<8x128xf32> -> vector<8x128xf32>
    %95 = arith.addf %92, %94 : vector<8x128xf32>
    %96 = arith.negf %95 : vector<8x128xf32>
    %97 = math.exp %96 : vector<8x128xf32>
    %cst_41 = arith.constant 1.000000e+00 : f32
    %98 = vector.broadcast %cst_41 : f32 to vector<8x128xf32>
    %99 = arith.addf %98, %97 : vector<8x128xf32>
    %100 = arith.divf %98, %99 : vector<8x128xf32>
    %101 = math.tanh %95 : vector<8x128xf32>
    %c64_i32_42 = arith.constant 64 : i32
    %102 = tpu.dynamic_rotate %100 by %c64_i32_42 dim 1 : vector<8x128xf32>, i32 -> vector<8x128xf32>
    %103 = arith.addf %100, %102 : vector<8x128xf32>
    %c32_i32_43 = arith.constant 32 : i32
    %104 = tpu.dynamic_rotate %103 by %c32_i32_43 dim 1 : vector<8x128xf32>, i32 -> vector<8x128xf32>
    %105 = arith.mulf %104, %101 : vector<8x128xf32>
    %106 = math.tanh %105 : vector<8x128xf32>
    %107 = arith.mulf %102, %106 : vector<8x128xf32>
    %108 = arith.maximumf %89, %107 : vector<8x128xf32>
    %c5_i32 = arith.constant 5 : i32
    %109 = arith.index_cast %c5_i32 : i32 to index
    %c0_44 = arith.constant 0 : index
    %c0_45 = arith.constant 0 : index
    %110 = vector.load %arg8[%109, %c0_44, %c0_45] : memref<8x8x128xf32, #tpu.memory_space<vmem>>, vector<1x8x128xf32>
    %111 = vector.shape_cast %110 : vector<1x8x128xf32> to vector<8x128xf32>
    %112 = arith.truncf %107 : vector<8x128xf32> to vector<8x128xbf16>
    %cst_46 = arith.constant dense<0.000000e+00> : vector<8x128xf32>
    %113 = tpu.matmul %112, %11, %cst_46 {dimension_numbers = #tpu.dot_dimension_numbers<[1], [0], [0], [1], [0, 0, 1, 1], [], []>} : vector<8x128xbf16>, vector<128x128xbf16>, vector<8x128xf32> -> vector<8x128xf32>
    %114 = arith.addf %111, %113 : vector<8x128xf32>
    %115 = arith.negf %114 : vector<8x128xf32>
    %116 = math.exp %115 : vector<8x128xf32>
    %cst_47 = arith.constant 1.000000e+00 : f32
    %117 = vector.broadcast %cst_47 : f32 to vector<8x128xf32>
    %118 = arith.addf %117, %116 : vector<8x128xf32>
    %119 = arith.divf %117, %118 : vector<8x128xf32>
    %120 = math.tanh %114 : vector<8x128xf32>
    %c64_i32_48 = arith.constant 64 : i32
    %121 = tpu.dynamic_rotate %119 by %c64_i32_48 dim 1 : vector<8x128xf32>, i32 -> vector<8x128xf32>
    %122 = arith.addf %119, %121 : vector<8x128xf32>
    %c32_i32_49 = arith.constant 32 : i32
    %123 = tpu.dynamic_rotate %122 by %c32_i32_49 dim 1 : vector<8x128xf32>, i32 -> vector<8x128xf32>
    %124 = arith.mulf %123, %120 : vector<8x128xf32>
    %125 = math.tanh %124 : vector<8x128xf32>
    %126 = arith.mulf %121, %125 : vector<8x128xf32>
    %127 = arith.maximumf %108, %126 : vector<8x128xf32>
    %c6_i32 = arith.constant 6 : i32
    %128 = arith.index_cast %c6_i32 : i32 to index
    %c0_50 = arith.constant 0 : index
    %c0_51 = arith.constant 0 : index
    %129 = vector.load %arg8[%128, %c0_50, %c0_51] : memref<8x8x128xf32, #tpu.memory_space<vmem>>, vector<1x8x128xf32>
    %130 = vector.shape_cast %129 : vector<1x8x128xf32> to vector<8x128xf32>
    %131 = arith.truncf %126 : vector<8x128xf32> to vector<8x128xbf16>
    %cst_52 = arith.constant dense<0.000000e+00> : vector<8x128xf32>
    %132 = tpu.matmul %131, %11, %cst_52 {dimension_numbers = #tpu.dot_dimension_numbers<[1], [0], [0], [1], [0, 0, 1, 1], [], []>} : vector<8x128xbf16>, vector<128x128xbf16>, vector<8x128xf32> -> vector<8x128xf32>
    %133 = arith.addf %130, %132 : vector<8x128xf32>
    %134 = arith.negf %133 : vector<8x128xf32>
    %135 = math.exp %134 : vector<8x128xf32>
    %cst_53 = arith.constant 1.000000e+00 : f32
    %136 = vector.broadcast %cst_53 : f32 to vector<8x128xf32>
    %137 = arith.addf %136, %135 : vector<8x128xf32>
    %138 = arith.divf %136, %137 : vector<8x128xf32>
    %139 = math.tanh %133 : vector<8x128xf32>
    %c64_i32_54 = arith.constant 64 : i32
    %140 = tpu.dynamic_rotate %138 by %c64_i32_54 dim 1 : vector<8x128xf32>, i32 -> vector<8x128xf32>
    %141 = arith.addf %138, %140 : vector<8x128xf32>
    %c32_i32_55 = arith.constant 32 : i32
    %142 = tpu.dynamic_rotate %141 by %c32_i32_55 dim 1 : vector<8x128xf32>, i32 -> vector<8x128xf32>
    %143 = arith.mulf %142, %139 : vector<8x128xf32>
    %144 = math.tanh %143 : vector<8x128xf32>
    %145 = arith.mulf %140, %144 : vector<8x128xf32>
    %146 = arith.maximumf %127, %145 : vector<8x128xf32>
    %c7_i32 = arith.constant 7 : i32
    %147 = arith.index_cast %c7_i32 : i32 to index
    %c0_56 = arith.constant 0 : index
    %c0_57 = arith.constant 0 : index
    %148 = vector.load %arg8[%147, %c0_56, %c0_57] : memref<8x8x128xf32, #tpu.memory_space<vmem>>, vector<1x8x128xf32>
    %149 = vector.shape_cast %148 : vector<1x8x128xf32> to vector<8x128xf32>
    %150 = arith.truncf %145 : vector<8x128xf32> to vector<8x128xbf16>
    %cst_58 = arith.constant dense<0.000000e+00> : vector<8x128xf32>
    %151 = tpu.matmul %150, %11, %cst_58 {dimension_numbers = #tpu.dot_dimension_numbers<[1], [0], [0], [1], [0, 0, 1, 1], [], []>} : vector<8x128xbf16>, vector<128x128xbf16>, vector<8x128xf32> -> vector<8x128xf32>
    %152 = arith.addf %149, %151 : vector<8x128xf32>
    %153 = arith.negf %152 : vector<8x128xf32>
    %154 = math.exp %153 : vector<8x128xf32>
    %cst_59 = arith.constant 1.000000e+00 : f32
    %155 = vector.broadcast %cst_59 : f32 to vector<8x128xf32>
    %156 = arith.addf %155, %154 : vector<8x128xf32>
    %157 = arith.divf %155, %156 : vector<8x128xf32>
    %158 = math.tanh %152 : vector<8x128xf32>
    %c64_i32_60 = arith.constant 64 : i32
    %159 = tpu.dynamic_rotate %157 by %c64_i32_60 dim 1 : vector<8x128xf32>, i32 -> vector<8x128xf32>
    %160 = arith.addf %157, %159 : vector<8x128xf32>
    %c32_i32_61 = arith.constant 32 : i32
    %161 = tpu.dynamic_rotate %160 by %c32_i32_61 dim 1 : vector<8x128xf32>, i32 -> vector<8x128xf32>
    %162 = arith.mulf %161, %158 : vector<8x128xf32>
    %163 = math.tanh %162 : vector<8x128xf32>
    %164 = arith.mulf %159, %163 : vector<8x128xf32>
    %165 = arith.maximumf %146, %164 : vector<8x128xf32>
    %c8_i32 = arith.constant 8 : i32
    %c0_62 = arith.constant 0 : index
    %c0_63 = arith.constant 0 : index
    %166 = vector.load %arg6[%c0_62, %c0_63] : memref<8x128xf32, #tpu.memory_space<vmem>>, vector<8x128xf32>
    tpu.vector_store %arg6[%c0_62, %c0_63], %164 {strides = array<i32>} : memref<8x128xf32, #tpu.memory_space<vmem>>, vector<8x128xf32>,
    %c0_64 = arith.constant 0 : index
    %c0_65 = arith.constant 0 : index
    %167 = vector.load %arg7[%c0_64, %c0_65] : memref<8x128xf32, #tpu.memory_space<vmem>>, vector<8x128xf32>
    tpu.vector_store %arg7[%c0_64, %c0_65], %165 {strides = array<i32>} : memref<8x128xf32, #tpu.memory_space<vmem>>, vector<8x128xf32>,
    %c0_i32_66 = arith.constant 0 : i32
    %168 = arith.cmpi eq, %arg0, %c0_i32_66 : i32
    %169 = arith.extui %168 : i1 to i32
    %c0_i32_67 = arith.constant 0 : i32
    %170 = arith.cmpi ne, %169, %c0_i32_67 : i32
    scf.if %170 {
      %c0_68 = arith.constant 0 : index
      %c0_69 = arith.constant 0 : index
      %171 = vector.load %arg5[%c0_68, %c0_69] : memref<8x128xf32, #tpu.memory_space<vmem>>, vector<8x128xf32>
      tpu.vector_store %arg5[%c0_68, %c0_69], %165 {strides = array<i32>} : memref<8x128xf32, #tpu.memory_space<vmem>>, vector<8x128xf32>,
    } else {
    }
    return
  }
  func.func @transform_0(%arg0: i32) -> (i32, i32) {
    %c0_i32 = arith.constant 0 : i32
    %c0_i32_0 = arith.constant 0 : i32
    return %arg0, %c0_i32 : i32, i32
  }
  func.func @transform_1(%arg0: i32) -> (i32, i32) {
    %c0_i32 = arith.constant 0 : i32
    %c0_i32_0 = arith.constant 0 : i32
    %c0_i32_1 = arith.constant 0 : i32
    return %c0_i32, %c0_i32_0 : i32, i32
  }
  func.func @transform_2(%arg0: i32) -> (i32, i32) {
    %c0_i32 = arith.constant 0 : i32
    %c0_i32_0 = arith.constant 0 : i32
    %c0_i32_1 = arith.constant 0 : i32
    return %c0_i32, %c0_i32_0 : i32, i32
  }
  func.func @transform_3(%arg0: i32) -> (i32, i32) {
    %c0_i32 = arith.constant 0 : i32
    %c0_i32_0 = arith.constant 0 : i32
    %c0_i32_1 = arith.constant 0 : i32
    return %c0_i32, %c0_i32_0 : i32, i32
  }
  func.func @transform_4(%arg0: i32) -> (i32, i32) {
    %c0_i32 = arith.constant 0 : i32
    %c0_i32_0 = arith.constant 0 : i32
    %c0_i32_1 = arith.constant 0 : i32
    return %c0_i32, %c0_i32_0 : i32, i32
  }
}

</mosaic_0001>

<bundles_post_ra>
// kernel: tpu_custom_call.1
= control target key start
LH: loop header
LB: loop body
LE: loop exit
PB: predicated region body
PF: predicated region fallthrough
CT: control target
= control target key end

     0   :  { %9 = vsyncpa [#allocation6], 0  ;;  %s931_s0 = inlined_call_operand.vmem [shape: bf16[64,32], index: 0, kind: input, shape index: {}]   ;;  %s932_s1 = inlined_call_operand.vmem [shape: bf16[32,128], index: 1, kind: input, shape index: {}]   ;;  %s933_s2 = inlined_call_operand.hbm [shape: bf16[128,128], index: 2, kind: input, shape index: {}]   ;;  %s934_s3 = inlined_call_operand.vmem [shape: f32[1,128], index: 3, kind: input, shape index: {}]   ;;  %s935_s4 = inlined_call_operand.hbm [shape: f32[8,128], index: 4, kind: output, shape index: {}]  }
   0x1   :  { %10 = vsyncpa [#allocation7], 0  ;;  %s19_s17 = sshll.u32 %s933_s2, 4  ;;  %s800_s18 = smov [#allocation5]   ;;  %s20_s17 = int_to_ptr.hbm [resolvable:$true] %s19_s17 }
   0x2   :  { %s21_s19 = sshll.u32 %s800_s18, 4  ;;  %s801_s20 = smov 64   ;;  %s22_s19 = int_to_ptr.vmem [resolvable:$true] %s21_s19 }
   0x3   :  { %s802_s21 = smov 4  }
   0x4   :  { %27 = dma.hbm_to_vmem [thread:$0]  %s20_s17, 1024, %s22_s19, [#allocation6], %s801_s20, %s801_s20, %s802_s21  }
   0x5   :  { %796 = dma.done.wait [#allocation6], 1024  }
   0x6   :  { %797 = vsyncadd [#allocation6], 4294966272  ;;  %v836_v0 = vld [vmem:[#allocation5 + $0x38] sm:$0xff]  ;;  %v668_v1 = vld [vmem:[%s932_s1 + $0x8] sm:$0xff]  ;;  %vm89_vm0 = vcmask 261120   ;;  %v803_v11 = vmov 0.0|0.0  }
   0x7   :  { %207 = vmatpush.bf16.msra.mxu1 %v836_v0  ;;  %v842_v2 = vld [vmem:[#allocation5 + $0x30] sm:$0xff]  ;;  %253 = vmatpush.bf16.msra.mxu2 %v836_v0  ;;  %v667_v3 = vld [vmem:[%s932_s1] sm:$0xff]  ;;  %v850_v4 = vld [vmem:[#allocation5 + $0x28] sm:$0xff]  ;;  %s585_s11 = sshll.u32 %s935_s4, 4  ;;  %s586_s11 = int_to_ptr.hbm [resolvable:$true] %s585_s11 }
   0x8   :  { %108 = vmatpush.bf16.msra.mxu0 %v668_v1  ;;  %299 = vmatpush.bf16.msra.mxu3 %v836_v0  ;;  %v663_v5 = vld [vmem:[%s931_s0] sm:$0xff]  ;;  %v672_v7 = vld [vmem:[#allocation5 + $0x18] sm:$0xff]  ;;  %v671_v8 = vld [vmem:[#allocation5 + $0x10] sm:$0xff] }
   0x9   :  { %v673_v6 = vld [vmem:[#allocation5 + $0x20] sm:$0xff]  ;;  %v670_v9 = vld [vmem:[#allocation5 + $0x8] sm:$0xff] }
   0xa   :  { %v669_v10 = vld [vmem:[#allocation5] sm:$0xff]  ;;  %v664_v59 = vld [vmem:[%s931_s0 + $0x8] sm:$0xff] }
   0xb   :  { %208 = vmatpush.bf16.msra.mxu1 %v842_v2  ;;  %254 = vmatpush.bf16.msra.mxu2 %v842_v2  ;;  %v879_v12 = vld [vmem:[%s934_s3] ss:$0 sm:$0xff]  ;;  %s804_s3 = smov 32  }
   0xc   :  { %109 = vmatpush.bf16.msra.mxu0 %v667_v3  ;;  %300 = vmatpush.bf16.msra.mxu3 %v842_v2 }
   0xf   :  { %209 = vmatpush.bf16.msra.mxu1 %v850_v4  ;;  %619 = vmatmul.msk.bf16.vlgmr.msra.gmra.mxu0 %vm89_vm0, %v663_v5 }
  0x10   :  { %483 = vmatpush.bf16.msrb.mxu0 %v836_v0  ;;  %255 = vmatpush.bf16.msra.mxu2 %v850_v4 }
  0x11   :  { %301 = vmatpush.bf16.msra.mxu3 %v850_v4 }
  0x13   :  { %210 = vmatpush.bf16.msra.mxu1 %v673_v6 }
  0x14   :  { %484 = vmatpush.bf16.msrb.mxu0 %v842_v2  ;;  %256 = vmatpush.bf16.msra.mxu2 %v673_v6 }
  0x15   :  { %302 = vmatpush.bf16.msra.mxu3 %v673_v6 }
  0x17   :  { %211 = vmatpush.bf16.msra.mxu1 %v672_v7 }
  0x18   :  { %485 = vmatpush.bf16.msrb.mxu0 %v850_v4  ;;  %257 = vmatpush.bf16.msra.mxu2 %v672_v7 }
  0x19   :  { %303 = vmatpush.bf16.msra.mxu3 %v672_v7 }
  0x1b   :  { %212 = vmatpush.bf16.msra.mxu1 %v671_v8 }
  0x1c   :  { %486 = vmatpush.bf16.msrb.mxu0 %v673_v6  ;;  %258 = vmatpush.bf16.msra.mxu2 %v671_v8 }
  0x1d   :  { %304 = vmatpush.bf16.msra.mxu3 %v671_v8 }
  0x1f   :  { %213 = vmatpush.bf16.msra.mxu1 %v670_v9  ;;  %620 = vmatmul.msk.bf16.gmra.mxu0 %vm89_vm0, %v664_v59 }
  0x20   :  { %487 = vmatpush.bf16.msrb.mxu0 %v672_v7  ;;  %259 = vmatpush.bf16.msra.mxu2 %v670_v9 }
  0x21   :  { %305 = vmatpush.bf16.msra.mxu3 %v670_v9 }
  0x23   :  { %214 = vmatpush.bf16.msra.mxu1 %v669_v10 }
  0x24   :  { %488 = vmatpush.bf16.msrb.mxu0 %v671_v8  ;;  %260 = vmatpush.bf16.msra.mxu2 %v669_v10 }
  0x25   :  { %306 = vmatpush.bf16.msra.mxu3 %v669_v10 }
  0x26   :  { %215 = vmatmul.bf16.vlgmr.msra.gmra.mxu1 %v803_v11 }
  0x27   :  { %345 = vmatpush.bf16.msrb.mxu1 %v836_v0 }
  0x28   :  { %391 = vmatpush.bf16.msrb.mxu2 %v836_v0  ;;  %489 = vmatpush.bf16.msrb.mxu0 %v670_v9 }
  0x29   :  { %437 = vmatpush.bf16.msrb.mxu3 %v836_v0 }
  0x2b   :  { %346 = vmatpush.bf16.msrb.mxu1 %v842_v2 }
  0x2c   :  { %392 = vmatpush.bf16.msrb.mxu2 %v842_v2  ;;  %490 = vmatpush.bf16.msrb.mxu0 %v669_v10 }
  0x2d   :  { %438 = vmatpush.bf16.msrb.mxu3 %v842_v2 }
  0x2f   :  { %347 = vmatpush.bf16.msrb.mxu1 %v850_v4 }
  0x30   :  { %393 = vmatpush.bf16.msrb.mxu2 %v850_v4 }
  0x31   :  { %439 = vmatpush.bf16.msrb.mxu3 %v850_v4 }
  0x33   :  { %348 = vmatpush.bf16.msrb.mxu1 %v673_v6 }
  0x34   :  { %394 = vmatpush.bf16.msrb.mxu2 %v673_v6 }
  0x35   :  { %440 = vmatpush.bf16.msrb.mxu3 %v673_v6 }
  0x37   :  { %349 = vmatpush.bf16.msrb.mxu1 %v672_v7 }
  0x38   :  { %395 = vmatpush.bf16.msrb.mxu2 %v672_v7 }
  0x39   :  { %441 = vmatpush.bf16.msrb.mxu3 %v672_v7 }
  0x3b   :  { %350 = vmatpush.bf16.msrb.mxu1 %v671_v8 }
  0x3c   :  { %396 = vmatpush.bf16.msrb.mxu2 %v671_v8 }
  0x3d   :  { %442 = vmatpush.bf16.msrb.mxu3 %v671_v8 }
  0x3f   :  { %351 = vmatpush.bf16.msrb.mxu1 %v670_v9 }
  0x40   :  { %397 = vmatpush.bf16.msrb.mxu2 %v670_v9 }
  0x41   :  { %443 = vmatpush.bf16.msrb.mxu3 %v670_v9 }
  0x43   :  { %352 = vmatpush.bf16.msrb.mxu1 %v669_v10 }
  0x44   :  { %398 = vmatpush.bf16.msrb.mxu2 %v669_v10 }
  0x45   :  { %444 = vmatpush.bf16.msrb.mxu3 %v669_v10 }
  0x47   :  { %529 = vmatpush.bf16.msra.mxu1 %v836_v0 }
  0x4b   :  { %530 = vmatpush.bf16.msra.mxu1 %v842_v2 }
  0x4f   :  { %531 = vmatpush.bf16.msra.mxu1 %v850_v4 }
  0x53   :  { %532 = vmatpush.bf16.msra.mxu1 %v673_v6 }
  0x57   :  { %533 = vmatpush.bf16.msra.mxu1 %v672_v7 }
  0x5b   :  { %534 = vmatpush.bf16.msra.mxu1 %v671_v8 }
  0x5f   :  { %535 = vmatpush.bf16.msra.mxu1 %v670_v9 }
  0x63   :  { %536 = vmatpush.bf16.msra.mxu1 %v669_v10 }
  0x8c   :  { %v111_v13 = vpop.f32.mrf.mxu0 }
  0x8d   :  { %v112_v14 = vadd.f32 %v879_v12, %v111_v13 }
  0x94   :  { %v113_v39 = vpop.f32.mrf.mxu0 }
  0x95   :  { %v114_v40 = vadd.f32 %v879_v12, %v113_v39 }
  0x9c   :  { %v116_v2 = vpop.f32.mrf.mxu0 }
  0x9d   :  { %v117_v3 = vadd.f32 %v879_v12, %v116_v2 }
  0xa3   :  { %v216_v15 = vpop.f32.mrf.mxu1 }
  0xa4   :  { %v220_v16 = vadd.f32 %v216_v15, %v112_v14 }
  0xa6   :  { %v655_v17 = vmul.f32 -1.442695, %v220_v16 }
  0xa8   :  { %684 = vpow2.f32 %v655_v17 }
  0xab   :  { %v218_v18 = vpop.f32.mrf.mxu1 }
  0xae   :  { %v685_v19 = vpop.eup %684 }
  0xaf   :  { %v224_v20 = vadd.f32 1.0, %v685_v19 }
  0xb1   :  { %686 = vrcp.f32 %v224_v20  ;;  %v236_v24 = vand.u32 2147483648, %v224_v20  ;;  %v234_v26 = vand.u32 2147483647, %v224_v20  ;;  %vm230_vm2 = vweird.f32 %v224_v20 }
  0xb2   :  { %688 = vtanh.f32 %v220_v16 }
  0xb3   :  { %v237_v28 = vor.u32 1.1754944e-38, %v236_v24  ;;  %vm235_vm4 = vcmp.eq.f32.partialorder %v234_v26, 8.507059e+37 }
  0xb7   :  { %v687_v21 = vpop.eup %686 }
  0xb8   :  { %v226_v22 = vmul.f32 %v687_v21, %v224_v20  ;;  %vm231_vm1 = vweird.f32 %v687_v21  ;;  %v689_v33 = vpop.eup %688 }
  0xb9   :  { %vm232_vm3 = vmor %vm230_vm2, %vm231_vm1 }
  0xba   :  { %v227_v23 = vsub.f32 1.0, %v226_v22 }
  0xbc   :  { %v228_v25 = vmul.f32 %v687_v21, %v227_v23 }
  0xbe   :  { %v229_v27 = vadd.f32 %v687_v21, %v228_v25 }
  0xc0   :  { %v233_v29 = vsel %vm232_vm3, %v687_v21, %v229_v27 }
  0xc1   :  { %v238_v30 = vsel %vm235_vm4, %v237_v28, %v233_v29 }
  0xc2   :  { %241 = vrot.lane.b32.xlu0 %v238_v30, %s801_s20 }
 0x134   :  { %v242_v31 = vpop.permute.xlu0 %241 }
 0x135   :  { %v243_v32 = vadd.f32 %v242_v31, %v238_v30 }
 0x137   :  { %244 = vrot.lane.b32.xlu0 %v243_v32, %s804_s3 }
 0x1a9   :  { %v245_v34 = vpop.permute.xlu0 %244 }
 0x1aa   :  { %v246_v35 = vmul.f32 %v689_v33, %v245_v34 }
 0x1ac   :  { %690 = vtanh.f32 %v246_v35 }
 0x1b2   :  { %v691_v36 = vpop.eup %690 }
 0x1b3   :  { %v884_v37 = vmul.f32 %v691_v36, %v242_v31  ;;  %v118_v31 = vpop.f32.mrf.mxu0 }
 0x1b4   :  { %v119_v32 = vadd.f32 %v879_v12, %v118_v31 }
 0x1b5   :  { %v252_v38 = vpack.c.bf16 %v884_v37, %v884_v37 }
 0x1b7   :  { %261 = vmatmul.bf16.vlgmr.msra.gmra.mxu2 %v252_v38 }
 0x23a   :  { %v262_v41 = vpop.f32.mrf.mxu2 }
 0x23b   :  { %v266_v42 = vadd.f32 %v262_v41, %v114_v40 }
 0x23d   :  { %v656_v43 = vmul.f32 -1.442695, %v266_v42 }
 0x23f   :  { %692 = vpow2.f32 %v656_v43 }
 0x242   :  { %v264_v44 = vpop.f32.mrf.mxu2 }
 0x245   :  { %v693_v45 = vpop.eup %692 }
 0x246   :  { %v270_v46 = vadd.f32 1.0, %v693_v45 }
 0x248   :  { %694 = vrcp.f32 %v270_v46  ;;  %v282_v50 = vand.u32 2147483648, %v270_v46  ;;  %v280_v52 = vand.u32 2147483647, %v270_v46  ;;  %vm276_vm6 = vweird.f32 %v270_v46 }
 0x249   :  { %696 = vtanh.f32 %v266_v42 }
 0x24a   :  { %v283_v54 = vor.u32 1.1754944e-38, %v282_v50  ;;  %vm281_vm8 = vcmp.eq.f32.partialorder %v280_v52, 8.507059e+37 }
 0x24e   :  { %v695_v47 = vpop.eup %694 }
 0x24f   :  { %v272_v48 = vmul.f32 %v695_v47, %v270_v46  ;;  %vm277_vm5 = vweird.f32 %v695_v47  ;;  %v697_v60 = vpop.eup %696 }
 0x250   :  { %vm278_vm7 = vmor %vm276_vm6, %vm277_vm5 }
 0x251   :  { %v273_v49 = vsub.f32 1.0, %v272_v48 }
 0x253   :  { %v274_v51 = vmul.f32 %v695_v47, %v273_v49 }
 0x255   :  { %v275_v53 = vadd.f32 %v695_v47, %v274_v51  ;;  %v665_v51 = vld [vmem:[%s931_s0 + $0x10] sm:$0xff] }
 0x256   :  { %621 = vmatmul.msk.bf16.gmra.mxu0 %vm89_vm0, %v665_v51 }
 0x257   :  { %v279_v55 = vsel %vm278_vm7, %v695_v47, %v275_v53 }
 0x258   :  { %v284_v56 = vsel %vm281_vm8, %v283_v54, %v279_v55 }
 0x259   :  { %287 = vrot.lane.b32.xlu1 %v284_v56, %s801_s20 }
 0x2cb   :  { %v288_v57 = vpop.permute.xlu1 %287 }
 0x2cc   :  { %v289_v58 = vadd.f32 %v288_v57, %v284_v56 }
 0x2ce   :  { %290 = vrot.lane.b32.xlu1 %v289_v58, %s804_s3 }
 0x2d3   :  { %v121_v59 = vpop.f32.mrf.mxu0 }
 0x340   :  { %v291_v61 = vpop.permute.xlu1 %290 }
 0x341   :  { %v292_v62 = vmul.f32 %v697_v60, %v291_v61  ;;  %v122_v60 = vadd.f32 %v879_v12, %v121_v59 }
 0x343   :  { %698 = vtanh.f32 %v292_v62 }
 0x349   :  { %v699_v63 = vpop.eup %698 }
 0x34a   :  { %v294_v0 = vmul.f32 %v699_v63, %v288_v57 }
 0x34c   :  { %v298_v1 = vpack.c.bf16 %v294_v0, %v294_v0  ;;  %v295_v27 = vmax.f32 %v884_v37, %v294_v0 }
 0x34e   :  { %307 = vmatmul.bf16.vlgmr.msra.gmra.mxu3 %v298_v1 }
 0x3d1   :  { %v308_v4 = vpop.f32.mrf.mxu3 }
 0x3d2   :  { %v312_v5 = vadd.f32 %v308_v4, %v117_v3 }
 0x3d4   :  { %v657_v6 = vmul.f32 -1.442695, %v312_v5 }
 0x3d6   :  { %700 = vpow2.f32 %v657_v6 }
 0x3d9   :  { %v310_v7 = vpop.f32.mrf.mxu3 }
 0x3dc   :  { %v701_v8 = vpop.eup %700 }
 0x3dd   :  { %v316_v9 = vadd.f32 1.0, %v701_v8 }
 0x3df   :  { %702 = vrcp.f32 %v316_v9  ;;  %v328_v14 = vand.u32 2147483648, %v316_v9  ;;  %v326_v16 = vand.u32 2147483647, %v316_v9  ;;  %vm322_vm10 = vweird.f32 %v316_v9 }
 0x3e0   :  { %704 = vtanh.f32 %v312_v5 }
 0x3e1   :  { %v329_v18 = vor.u32 1.1754944e-38, %v328_v14  ;;  %vm327_vm12 = vcmp.eq.f32.partialorder %v326_v16, 8.507059e+37 }
 0x3e5   :  { %v703_v10 = vpop.eup %702 }
 0x3e6   :  { %v318_v11 = vmul.f32 %v703_v10, %v316_v9  ;;  %vm323_vm9 = vweird.f32 %v703_v10  ;;  %v705_v23 = vpop.eup %704 }
 0x3e7   :  { %vm324_vm11 = vmor %vm322_vm10, %vm323_vm9 }
 0x3e8   :  { %v319_v13 = vsub.f32 1.0, %v318_v11 }
 0x3ea   :  { %v320_v15 = vmul.f32 %v703_v10, %v319_v13 }
 0x3ec   :  { %v321_v17 = vadd.f32 %v703_v10, %v320_v15 }
 0x3ee   :  { %v325_v19 = vsel %vm324_vm11, %v703_v10, %v321_v17 }
 0x3ef   :  { %v330_v20 = vsel %vm327_vm12, %v329_v18, %v325_v19 }
 0x3f0   :  { %333 = vrot.lane.b32.xlu2 %v330_v20, %s801_s20 }
 0x44a   :  { %v334_v21 = vpop.permute.xlu2 %333 }
 0x44b   :  { %v335_v22 = vadd.f32 %v334_v21, %v330_v20 }
 0x44d   :  { %336 = vrot.lane.b32.xlu2 %v335_v22, %s804_s3 }
 0x4a7   :  { %v337_v24 = vpop.permute.xlu2 %336 }
 0x4a8   :  { %v338_v25 = vmul.f32 %v705_v23, %v337_v24  ;;  %v123_v23 = vpop.f32.mrf.mxu0 }
 0x4a9   :  { %v124_v24 = vadd.f32 %v879_v12, %v123_v23 }
 0x4aa   :  { %706 = vtanh.f32 %v338_v25 }
 0x4b0   :  { %v707_v26 = vpop.eup %706 }
 0x4b1   :  { %v340_v28 = vmul.f32 %v707_v26, %v334_v21 }
 0x4b3   :  { %v899_v29 = vmax.f32 %v295_v27, %v340_v28  ;;  %v344_v30 = vpack.c.bf16 %v340_v28, %v340_v28 }
 0x4b5   :  { %353 = vmatmul.bf16.vlgmr.msrb.gmra.mxu1 %v344_v30 }
 0x532   :  { %v354_v33 = vpop.f32.mrf.mxu1 }
 0x533   :  { %v358_v34 = vadd.f32 %v354_v33, %v119_v32 }
 0x535   :  { %v658_v35 = vmul.f32 -1.442695, %v358_v34 }
 0x537   :  { %708 = vpow2.f32 %v658_v35 }
 0x53a   :  { %v356_v36 = vpop.f32.mrf.mxu1 }
 0x53d   :  { %v709_v38 = vpop.eup %708 }
 0x53e   :  { %v362_v39 = vadd.f32 1.0, %v709_v38 }
 0x540   :  { %710 = vrcp.f32 %v362_v39  ;;  %v374_v37 = vand.u32 2147483648, %v362_v39  ;;  %v372_v44 = vand.u32 2147483647, %v362_v39  ;;  %vm368_vm14 = vweird.f32 %v362_v39 }
 0x541   :  { %712 = vtanh.f32 %v358_v34 }
 0x542   :  { %v375_v46 = vor.u32 1.1754944e-38, %v374_v37  ;;  %vm373_vm1 = vcmp.eq.f32.partialorder %v372_v44, 8.507059e+37 }
 0x546   :  { %v711_v40 = vpop.eup %710 }
 0x547   :  { %v364_v41 = vmul.f32 %v711_v40, %v362_v39  ;;  %vm369_vm13 = vweird.f32 %v711_v40  ;;  %v713_v52 = vpop.eup %712 }
 0x548   :  { %vm370_vm15 = vmor %vm368_vm14, %vm369_vm13 }
 0x549   :  { %v365_v42 = vsub.f32 1.0, %v364_v41 }
 0x54b   :  { %v366_v43 = vmul.f32 %v711_v40, %v365_v42  ;;  %v666_v42 = vld [vmem:[%s931_s0 + $0x18] sm:$0xff]  ;;  %s805_s0 = smov [#allocation8]  }
 0x54c   :  { %622 = vmatmul.msk.bf16.gmra.mxu0 %vm89_vm0, %v666_v42  ;;  %s583_s8 = sshll.u32 %s805_s0, 4  ;;  %s584_s8 = int_to_ptr.vmem [resolvable:$true] %s583_s8 }
 0x54d   :  { %v367_v45 = vadd.f32 %v711_v40, %v366_v43 }
 0x54f   :  { %v371_v47 = vsel %vm370_vm15, %v711_v40, %v367_v45 }
 0x550   :  { %v376_v48 = vsel %vm373_vm1, %v375_v46, %v371_v47 }
 0x551   :  { %379 = vrot.lane.b32.xlu0 %v376_v48, %s801_s20 }
 0x5c3   :  { %v380_v49 = vpop.permute.xlu0 %379 }
 0x5c4   :  { %v381_v50 = vadd.f32 %v380_v49, %v376_v48 }
 0x5c6   :  { %382 = vrot.lane.b32.xlu1 %v381_v50, %s804_s3 }
 0x5c9   :  { %v126_v51 = vpop.f32.mrf.mxu0 }
 0x638   :  { %v383_v53 = vpop.permute.xlu1 %382 }
 0x639   :  { %v384_v54 = vmul.f32 %v713_v52, %v383_v53  ;;  %v128_v52 = vpop.f32.mrf.mxu0  ;;  %v127_v53 = vadd.f32 %v879_v12, %v126_v51 }
 0x63b   :  { %714 = vtanh.f32 %v384_v54 }
 0x641   :  { %v715_v55 = vpop.eup %714 }
 0x642   :  { %v386_v56 = vmul.f32 %v715_v55, %v380_v49 }
 0x644   :  { %v387_v57 = vmax.f32 %v899_v29, %v386_v56  ;;  %v390_v58 = vpack.c.bf16 %v386_v56, %v386_v56 }
 0x646   :  { %399 = vmatmul.bf16.vlgmr.msrb.gmra.mxu2 %v390_v58 }
 0x6c9   :  { %v400_v61 = vpop.f32.mrf.mxu2 }
 0x6ca   :  { %v404_v62 = vadd.f32 %v400_v61, %v122_v60 }
 0x6cc   :  { %v659_v63 = vmul.f32 -1.442695, %v404_v62 }
 0x6ce   :  { %716 = vpow2.f32 %v659_v63 }
 0x6d1   :  { %v402_v0 = vpop.f32.mrf.mxu2 }
 0x6d4   :  { %v717_v1 = vpop.eup %716 }
 0x6d5   :  { %v408_v2 = vadd.f32 1.0, %v717_v1 }
 0x6d7   :  { %718 = vrcp.f32 %v408_v2  ;;  %v420_v6 = vand.u32 2147483648, %v408_v2  ;;  %v418_v8 = vand.u32 2147483647, %v408_v2  ;;  %vm414_vm3 = vweird.f32 %v408_v2 }
 0x6d8   :  { %720 = vtanh.f32 %v404_v62 }
 0x6d9   :  { %v421_v10 = vor.u32 1.1754944e-38, %v420_v6  ;;  %vm419_vm5 = vcmp.eq.f32.partialorder %v418_v8, 8.507059e+37 }
 0x6dd   :  { %v719_v3 = vpop.eup %718 }
 0x6de   :  { %v410_v4 = vmul.f32 %v719_v3, %v408_v2  ;;  %vm415_vm2 = vweird.f32 %v719_v3  ;;  %v721_v16 = vpop.eup %720 }
 0x6df   :  { %vm416_vm4 = vmor %vm414_vm3, %vm415_vm2 }
 0x6e0   :  { %v411_v5 = vsub.f32 1.0, %v410_v4 }
 0x6e2   :  { %v412_v7 = vmul.f32 %v719_v3, %v411_v5 }
 0x6e4   :  { %v413_v9 = vadd.f32 %v719_v3, %v412_v7 }
 0x6e6   :  { %v417_v11 = vsel %vm416_vm4, %v719_v3, %v413_v9 }
 0x6e7   :  { %v422_v13 = vsel %vm419_vm5, %v421_v10, %v417_v11 }
 0x6e8   :  { %425 = vrot.lane.b32.xlu2 %v422_v13, %s801_s20 }
 0x742   :  { %v426_v14 = vpop.permute.xlu2 %425 }
 0x743   :  { %v427_v15 = vadd.f32 %v426_v14, %v422_v13 }
 0x745   :  { %428 = vrot.lane.b32.xlu0 %v427_v15, %s804_s3 }
 0x7b7   :  { %v429_v17 = vpop.permute.xlu0 %428 }
 0x7b8   :  { %v430_v18 = vmul.f32 %v721_v16, %v429_v17  ;;  %v129_v16 = vadd.f32 %v879_v12, %v128_v52 }
 0x7ba   :  { %722 = vtanh.f32 %v430_v18 }
 0x7c0   :  { %v723_v19 = vpop.eup %722 }
 0x7c1   :  { %v432_v20 = vmul.f32 %v723_v19, %v426_v14 }
 0x7c3   :  { %v912_v21 = vmax.f32 %v387_v57, %v432_v20  ;;  %v436_v22 = vpack.c.bf16 %v432_v20, %v432_v20 }
 0x7c5   :  { %445 = vmatmul.bf16.vlgmr.msrb.gmra.mxu3 %v436_v22 }
 0x848   :  { %v446_v25 = vpop.f32.mrf.mxu3 }
 0x849   :  { %v450_v26 = vadd.f32 %v446_v25, %v124_v24 }
 0x84b   :  { %v660_v27 = vmul.f32 -1.442695, %v450_v26 }
 0x84d   :  { %724 = vpow2.f32 %v660_v27 }
 0x850   :  { %v448_v28 = vpop.f32.mrf.mxu3 }
 0x853   :  { %v725_v29 = vpop.eup %724 }
 0x854   :  { %v454_v30 = vadd.f32 1.0, %v725_v29 }
 0x856   :  { %726 = vrcp.f32 %v454_v30  ;;  %v466_v34 = vand.u32 2147483648, %v454_v30  ;;  %v464_v36 = vand.u32 2147483647, %v454_v30  ;;  %vm460_vm7 = vweird.f32 %v454_v30 }
 0x857   :  { %728 = vtanh.f32 %v450_v26 }
 0x858   :  { %v467_v39 = vor.u32 1.1754944e-38, %v466_v34  ;;  %vm465_vm9 = vcmp.eq.f32.partialorder %v464_v36, 8.507059e+37 }
 0x85c   :  { %v727_v31 = vpop.eup %726 }
 0x85d   :  { %v456_v32 = vmul.f32 %v727_v31, %v454_v30  ;;  %vm461_vm6 = vweird.f32 %v727_v31  ;;  %v729_v44 = vpop.eup %728 }
 0x85e   :  { %vm462_vm8 = vmor %vm460_vm7, %vm461_vm6 }
 0x85f   :  { %v457_v33 = vsub.f32 1.0, %v456_v32 }
 0x861   :  { %v458_v35 = vmul.f32 %v727_v31, %v457_v33 }
 0x863   :  { %v459_v38 = vadd.f32 %v727_v31, %v458_v35 }
 0x865   :  { %v463_v40 = vsel %vm462_vm8, %v727_v31, %v459_v38 }
 0x866   :  { %v468_v41 = vsel %vm465_vm9, %v467_v39, %v463_v40 }
 0x867   :  { %471 = vrot.lane.b32.xlu1 %v468_v41, %s801_s20 }
 0x8d9   :  { %v472_v37 = vpop.permute.xlu1 %471 }
 0x8da   :  { %v473_v43 = vadd.f32 %v472_v37, %v468_v41 }
 0x8dc   :  { %474 = vrot.lane.b32.xlu2 %v473_v43, %s804_s3 }
 0x936   :  { %v475_v45 = vpop.permute.xlu2 %474 }
 0x937   :  { %v476_v46 = vmul.f32 %v729_v44, %v475_v45 }
 0x939   :  { %730 = vtanh.f32 %v476_v46 }
 0x93f   :  { %v731_v47 = vpop.eup %730 }
 0x940   :  { %v478_v48 = vmul.f32 %v731_v47, %v472_v37 }
 0x942   :  { %v479_v49 = vmax.f32 %v912_v21, %v478_v48  ;;  %v482_v50 = vpack.c.bf16 %v478_v48, %v478_v48 }
 0x944   :  { %491 = vmatmul.bf16.vlgmr.msrb.gmra.mxu0 %v482_v50 }
 0x9c1   :  { %v492_v54 = vpop.f32.mrf.mxu0 }
 0x9c2   :  { %v496_v55 = vadd.f32 %v492_v54, %v127_v53 }
 0x9c4   :  { %v661_v56 = vmul.f32 -1.442695, %v496_v55 }
 0x9c6   :  { %732 = vpow2.f32 %v661_v56 }
 0x9c9   :  { %v494_v57 = vpop.f32.mrf.mxu0 }
 0x9cc   :  { %v733_v58 = vpop.eup %732 }
 0x9cd   :  { %v500_v59 = vadd.f32 1.0, %v733_v58 }
 0x9cf   :  { %734 = vrcp.f32 %v500_v59  ;;  %v512_v63 = vand.u32 2147483648, %v500_v59  ;;  %v510_v1 = vand.u32 2147483647, %v500_v59  ;;  %vm506_vm10 = vweird.f32 %v500_v59 }
 0x9d0   :  { %736 = vtanh.f32 %v496_v55 }
 0x9d1   :  { %v513_v3 = vor.u32 1.1754944e-38, %v512_v63  ;;  %vm511_vm12 = vcmp.eq.f32.partialorder %v510_v1, 8.507059e+37 }
 0x9d5   :  { %v735_v60 = vpop.eup %734 }
 0x9d6   :  { %v502_v61 = vmul.f32 %v735_v60, %v500_v59  ;;  %vm507_vm0 = vweird.f32 %v735_v60  ;;  %v737_v8 = vpop.eup %736 }
 0x9d7   :  { %vm508_vm11 = vmor %vm506_vm10, %vm507_vm0 }
 0x9d8   :  { %v503_v62 = vsub.f32 1.0, %v502_v61 }
 0x9da   :  { %v504_v0 = vmul.f32 %v735_v60, %v503_v62 }
 0x9dc   :  { %v505_v2 = vadd.f32 %v735_v60, %v504_v0 }
 0x9de   :  { %v509_v4 = vsel %vm508_vm11, %v735_v60, %v505_v2 }
 0x9df   :  { %v514_v5 = vsel %vm511_vm12, %v513_v3, %v509_v4 }
 0x9e0   :  { %517 = vrot.lane.b32.xlu0 %v514_v5, %s801_s20 }
 0xa52   :  { %v518_v6 = vpop.permute.xlu0 %517 }
 0xa53   :  { %v519_v7 = vadd.f32 %v518_v6, %v514_v5 }
 0xa55   :  { %520 = vrot.lane.b32.xlu1 %v519_v7, %s804_s3 }
 0xac7   :  { %v521_v9 = vpop.permute.xlu1 %520 }
 0xac8   :  { %v522_v10 = vmul.f32 %v737_v8, %v521_v9 }
 0xaca   :  { %738 = vtanh.f32 %v522_v10 }
 0xad0   :  { %v739_v11 = vpop.eup %738 }
 0xad1   :  { %v524_v13 = vmul.f32 %v739_v11, %v518_v6 }
 0xad3   :  { %v528_v14 = vpack.c.bf16 %v524_v13, %v524_v13  ;;  %v525_v15 = vmax.f32 %v479_v49, %v524_v13 }
 0xad5   :  { %537 = vmatmul.bf16.vlgmr.msra.gmra.mxu1 %v528_v14 }
 0xb52   :  { %v538_v17 = vpop.f32.mrf.mxu1 }
 0xb53   :  { %v542_v18 = vadd.f32 %v538_v17, %v129_v16 }
 0xb55   :  { %v662_v19 = vmul.f32 -1.442695, %v542_v18 }
 0xb57   :  { %740 = vpow2.f32 %v662_v19 }
 0xb5a   :  { %v540_v20 = vpop.f32.mrf.mxu1 }
 0xb5d   :  { %v741_v21 = vpop.eup %740 }
 0xb5e   :  { %v546_v22 = vadd.f32 1.0, %v741_v21 }
 0xb60   :  { %742 = vrcp.f32 %v546_v22  ;;  %v558_v26 = vand.u32 2147483648, %v546_v22  ;;  %v556_v28 = vand.u32 2147483647, %v546_v22  ;;  %vm552_vm14 = vweird.f32 %v546_v22 }
 0xb61   :  { %744 = vtanh.f32 %v542_v18 }
 0xb62   :  { %v559_v30 = vor.u32 1.1754944e-38, %v558_v26  ;;  %vm557_vm1 = vcmp.eq.f32.partialorder %v556_v28, 8.507059e+37 }
 0xb66   :  { %v743_v23 = vpop.eup %742 }
 0xb67   :  { %v548_v24 = vmul.f32 %v743_v23, %v546_v22  ;;  %vm553_vm13 = vweird.f32 %v743_v23  ;;  %v745_v34 = vpop.eup %744 }
 0xb68   :  { %vm554_vm15 = vmor %vm552_vm14, %vm553_vm13 }
 0xb69   :  { %v549_v25 = vsub.f32 1.0, %v548_v24 }
 0xb6b   :  { %v550_v27 = vmul.f32 %v743_v23, %v549_v25 }
 0xb6d   :  { %v551_v29 = vadd.f32 %v743_v23, %v550_v27 }
 0xb6f   :  { %v555_v12 = vsel %vm554_vm15, %v743_v23, %v551_v29 }
 0xb70   :  { %v560_v31 = vsel %vm557_vm1, %v559_v30, %v555_v12 }
 0xb71   :  { %563 = vrot.lane.b32.xlu2 %v560_v31, %s801_s20 }
 0xbcb   :  { %v564_v32 = vpop.permute.xlu2 %563 }
 0xbcc   :  { %v565_v33 = vadd.f32 %v564_v32, %v560_v31 }
 0xbce   :  { %566 = vrot.lane.b32.xlu0 %v565_v33, %s804_s3 }
 0xc40   :  { %v567_v35 = vpop.permute.xlu0 %566 }
 0xc41   :  { %v568_v36 = vmul.f32 %v745_v34, %v567_v35 }
 0xc43   :  { %746 = vtanh.f32 %v568_v36 }
 0xc49   :  { %v747_v38 = vpop.eup %746 }
 0xc4a   :  { %v570_v39 = vmul.f32 %v747_v38, %v564_v32 }
 0xc4c   :  { %v571_v40 = vmax.f32 %v525_v15, %v570_v39 }
 0xc4e   :  { %577 = vst [vmem:[#allocation8] sm:$0xff] %v571_v40 }
 0xc4f   :  { %588 = dma.vmem_to_hbm [thread:$0]  %s584_s8, 128, %s586_s11, [#allocation7]  }
 0xc50   :  { %798 = dma.done.wait [#allocation7], 128  }
 0xc51   :  { %799 = vsyncadd [#allocation7], 4294967168 }
 0xc52   :  { %593 = vsyncpa [#allocation6], 1 }
 0xc53   :  { %594 = vsyncpa [#allocation7], 1 }

</bundles_post_ra>
